<compile_context>
chip_gen: v5e
topology: v5e:2x2
jax: 0.10.0
libtpu: 0.0.40
codegen_flags: <defaults>
</compile_context>

<pallas_src>
import jax
import jax.numpy as jnp
from jax.experimental import pallas as pl
from jax.experimental.pallas import tpu as pltpu


def _rup(a, m):
    """Round a up to a multiple of m."""
    return -(-a // m) * m


# ------------------------- kernels -------------------------
# Weight arrives pre-transposed as (K, N): contraction is a plain jnp.dot.


def _linear_kernel_bias(x_ref, w_ref, b_ref, o_ref):
    """2-D grid (i, j); full K resident -> single MXU pass, no accumulator."""
    acc = jnp.dot(x_ref[...], w_ref[...], preferred_element_type=jnp.float32)
    o_ref[...] = (acc + b_ref[...]).astype(o_ref.dtype)


def _linear_kernel_nobias(x_ref, w_ref, o_ref):
    o_ref[...] = jnp.dot(
        x_ref[...], w_ref[...], preferred_element_type=jnp.float32
    ).astype(o_ref.dtype)


def _linear_kernel_ksplit_bias(x_ref, w_ref, b_ref, o_ref, acc_ref):
    """3-D grid (i, j, k); K reduction last ("arbitrary"), fp32 VMEM accumulator."""

    @pl.when(pl.program_id(2) == 0)
    def _():
        # Bias folded into accumulator init -> epilogue is a pure cast/store.
        acc_ref[...] = jnp.broadcast_to(
            b_ref[...].astype(jnp.float32), acc_ref.shape
        )

    acc_ref[...] += jnp.dot(
        x_ref[...], w_ref[...], preferred_element_type=jnp.float32
    )

    @pl.when(pl.program_id(2) == pl.num_programs(2) - 1)
    def _():
        o_ref[...] = acc_ref[...].astype(o_ref.dtype)


def _linear_kernel_ksplit_nobias(x_ref, w_ref, o_ref, acc_ref):
    @pl.when(pl.program_id(2) == 0)
    def _():
        acc_ref[...] = jnp.zeros_like(acc_ref)

    acc_ref[...] += jnp.dot(
        x_ref[...], w_ref[...], preferred_element_type=jnp.float32
    )

    @pl.when(pl.program_id(2) == pl.num_programs(2) - 1)
    def _():
        o_ref[...] = acc_ref[...].astype(o_ref.dtype)


# ------------------------- wrapper -------------------------


def linear_dummy(x, weight, bias=None, gain=1, *,
                 compute_dtype=jnp.bfloat16, tm=None, tn=None, tk=None):
    """F.linear(x, weight, bias) via a Pallas TPU matmul kernel.

    `gain` is accepted for API parity with the module's forward and ignored
    (the reference module never uses it).
    """
    del gain
    orig_shape = x.shape
    K = orig_shape[-1]
    x2 = x.reshape(-1, K)
    M = x2.shape[0]
    N, K2 = weight.shape
    assert K == K2, f"in_channels mismatch: {K} vs {K2}"
    out_dtype = x.dtype

    # One-time cast (bf16 MXU feed) + transpose to (K, N) outside the kernel.
    xc = x2.astype(compute_dtype)
    wt = weight.astype(compute_dtype).T          # (K, N): K-major RHS for the MXU
    has_bias = bias is not None

    # --- generation-aware VMEM budget ---
    try:
        vmem_cap = int(pltpu.get_tpu_info().vmem_capacity_bytes)
    except Exception:  # no TPU info available at trace time
        vmem_cap = 64 * 1024 * 1024              # conservative (v7x per-TC)
    # Tile budget: leave headroom for compiler scratch; cap so a v7x TensorCore
    # (64 MiB) is never oversubscribed even if capacity is reported per-chip.
    tile_budget = min(vmem_cap // 2, 44 * 1024 * 1024)
    vmem_limit = min(vmem_cap, 64 * 1024 * 1024)

    cbytes = jnp.dtype(compute_dtype).itemsize
    obytes = jnp.dtype(out_dtype).itemsize

    # --- tile selection (lane/MXU aligned, as large as the budget allows) ---
    auto_tn = tn is None
    if tm is None:
        tm = min(512, _rup(M, 128)) if M >= 128 else _rup(M, 8)
    else:
        tm = min(_rup(tm, 8), _rup(M, 8))
    if tn is None:
        tn = min(512, _rup(N, 128))
    else:
        tn = min(_rup(tn, 128), _rup(N, 128))

    def _usage(tk_, ksplit):
        u = 2 * (tm * tk_ + tk_ * tn) * cbytes        # double-buffered x / w tiles
        u += 2 * tm * tn * obytes                      # double-buffered out tile
        u += 2 * 8 * tn * 4                            # (1->8 sublane) bias tile
        if ksplit:
            u += tm * tn * 4                           # fp32 accumulator scratch
        return u

    if tk is None:
        k_full = _rup(K, 128)
        if _usage(k_full, False) <= tile_budget:
            tk = k_full                                # full-K: no reduction axis
        else:
            tk, t = 128, 256
            while t <= 4096:
                if _usage(t, True) <= tile_budget:
                    tk = t
                t += 128
    else:
        tk = min(_rup(tk, 128), _rup(K, 128))

    # --- pad to tile multiples (zeros are exact for matmul + bias) ---
    Mp, Np, Kp = _rup(M, tm), _rup(N, tn), _rup(K, tk)
    gm, gn, gk = Mp // tm, Np // tn, Kp // tk

    # Keep both v7x TensorCores busy: guarantee >=2 blocks on a parallel axis.
    if auto_tn and gm * gn == 1 and Np >= 256 and Np % 256 == 0:
        tn = Np // 2
        gn = 2

    if Mp != M or Kp != K:
        xc = jnp.pad(xc, ((0, Mp - M), (0, Kp - K)))
    if Kp != K or Np != N:
        wt = jnp.pad(wt, ((0, Kp - K), (0, Np - N)))
    if has_bias:
        b2 = bias.reshape(1, N).astype(jnp.float32)
        if Np != N:
            b2 = jnp.pad(b2, ((0, 0), (0, Np - N)))

    # --- grid / specs ---
    if gk == 1:
        grid = (gm, gn)
        in_specs = [
            pl.BlockSpec((tm, Kp), lambda i, j: (i, 0)),   # x   (full K slab)
            pl.BlockSpec((Kp, tn), lambda i, j: (0, j)),   # w^T (full K slab)
        ]
        args = [xc, wt]
        if has_bias:
            in_specs.append(pl.BlockSpec((1, tn), lambda i, j: (0, j)))
            args.append(b2)
        out_specs = pl.BlockSpec((tm, tn), lambda i, j: (i, j))
        scratch = []
        kernel = _linear_kernel_bias if has_bias else _linear_kernel_nobias
        dims = ("parallel", "parallel")
    else:
        grid = (gm, gn, gk)
        in_specs = [
            pl.BlockSpec((tm, tk), lambda i, j, k: (i, k)),  # x
            pl.BlockSpec((tk, tn), lambda i, j, k: (k, j)),  # w^T
        ]
        args = [xc, wt]
        if has_bias:
            in_specs.append(pl.BlockSpec((1, tn), lambda i, j, k: (0, j)))
            args.append(b2)
        out_specs = pl.BlockSpec((tm, tn), lambda i, j, k: (i, j))
        scratch = [pltpu.VMEM((tm, tn), jnp.float32)]
        kernel = _linear_kernel_ksplit_bias if has_bias else _linear_kernel_ksplit_nobias
        dims = ("parallel", "parallel", "arbitrary")

    out2 = pl.pallas_call(
        kernel,
        out_shape=jax.ShapeDtypeStruct((Mp, Np), out_dtype),
        grid_spec=pltpu.PrefetchScalarGridSpec(
            num_scalar_prefetch=0,
            grid=grid,
            in_specs=in_specs,
            out_specs=out_specs,
            scratch_shapes=scratch,
        ),
        compiler_params=pltpu.CompilerParams(
            dimension_semantics=dims,
            vmem_limit_bytes=vmem_limit,
        ),
    )(*args)

    if Mp != M or Np != N:
        out2 = out2[:M, :N]
    return out2.reshape(orig_shape[:-1] + (N,))


# ------------------------- test -------------------------

if __name__ == "__main__":
    key = jax.random.PRNGKey(0)

    def max_rel_err(out, ref):
        out = jnp.asarray(out, jnp.float32)
        return float(jnp.max(jnp.abs(out - ref)) / (jnp.max(jnp.abs(ref)) + 1e-6))

    # 1) Module config from the spec: in_channels=128, out_channels=128, bias=zeros.
    #    Small shape -> single-block, full-K, bf16-MXU / fp32-accumulate path.
    in_ch, out_ch, batch = 128, 128, 8
    kx, kw, key = jax.random.split(key, 3)
    x = jax.random.normal(kx, (batch, in_ch), dtype=jnp.float32)
    w = jax.random.normal(kw, (out_ch, in_ch), dtype=jnp.float32)
    b = jnp.zeros((out_ch,), dtype=jnp.float32)
    out = jax.block_until_ready(linear_dummy(x, w, b))
    ref = x @ w.T + b
    assert out.shape == (batch, out_ch)
    assert max_rel_err(out, ref) < 2e-2, max_rel_err(out, ref)

    # 2) Larger shape with explicit small tiles -> forces the K-split accumulation
    #    path (bias-in-init, fp32 scratch accumulator, multi-block M/N).
    M2, K2, N2 = 128, 512, 256
    kx2, kw2, kb2, key = jax.random.split(key, 4)
    x2 = jax.random.normal(kx2, (M2, K2), dtype=jnp.float32)
    w2 = jax.random.normal(kw2, (N2, K2), dtype=jnp.float32)
    b2 = jax.random.normal(kb2, (N2,), dtype=jnp.float32)
    out2 = jax.block_until_ready(linear_dummy(x2, w2, b2, tm=64, tn=128, tk=128))
    ref2 = x2 @ w2.T + b2
    assert out2.shape == (M2, N2)
    assert max_rel_err(out2, ref2) < 2e-2, max_rel_err(out2, ref2)

    # 3) fp32 compute path, no bias, ragged M (exercises padding + no-bias kernel).
    M3, K3, N3 = 50, 128, 256
    kx3, kw3, key = jax.random.split(key, 3)
    x3 = jax.random.normal(kx3, (M3, K3), dtype=jnp.float32)
    w3 = jax.random.normal(kw3, (N3, K3), dtype=jnp.float32)
    out3 = jax.block_until_ready(linear_dummy(x3, w3, None, compute_dtype=jnp.float32))
    ref3 = x3 @ w3.T
    assert out3.shape == (M3, N3)
    assert jnp.allclose(out3, ref3, atol=1e-3, rtol=1e-3)

    print("KERNEL_OK")
</pallas_src>

<mosaic_0001>
module attributes {stable_mosaic.version = 11 : i64} {
  func.func @_linear_kernel_bias(%arg0: i32, %arg1: i32, %arg2: memref<8x128xbf16, #tpu.memory_space<vmem>>, %arg3: memref<128x128xbf16, #tpu.memory_space<vmem>>, %arg4: memref<1x128xf32, #tpu.memory_space<vmem>>, %arg5: memref<8x128xf32, #tpu.memory_space<vmem>>) attributes {dimension_semantics = [#tpu.dimension_semantics<parallel>, #tpu.dimension_semantics<parallel>], iteration_bounds = array<i64: 1, 1>, scalar_prefetch = 0 : i64, scratch_operands = 0 : i64, tpu.core_type = #tpu.core_type<tc>, window_params = [{transform_indices = @transform_0, window_bounds = array<i64: 8, 128>}, {transform_indices = @transform_1, window_bounds = array<i64: 128, 128>}, {transform_indices = @transform_2, window_bounds = array<i64: 1, 128>}, {transform_indices = @transform_3, window_bounds = array<i64: 8, 128>}]} {
    %c0 = arith.constant 0 : index
    %c0_0 = arith.constant 0 : index
    %0 = vector.load %arg2[%c0, %c0_0] : memref<8x128xbf16, #tpu.memory_space<vmem>>, vector<8x128xbf16>
    %c0_1 = arith.constant 0 : index
    %c0_2 = arith.constant 0 : index
    %1 = vector.load %arg3[%c0_1, %c0_2] : memref<128x128xbf16, #tpu.memory_space<vmem>>, vector<128x128xbf16>
    %cst = arith.constant dense<0.000000e+00> : vector<8x128xf32>
    %2 = tpu.matmul %0, %1, %cst {dimension_numbers = #tpu.dot_dimension_numbers<[1], [0], [0], [1], [0, 0, 1, 1], [], []>} : vector<8x128xbf16>, vector<128x128xbf16>, vector<8x128xf32> -> vector<8x128xf32>
    %c0_3 = arith.constant 0 : index
    %c0_4 = arith.constant 0 : index
    %3 = vector.load %arg4[%c0_3, %c0_4] : memref<1x128xf32, #tpu.memory_space<vmem>>, vector<1x128xf32>
    %4 = vector.broadcast %3 : vector<1x128xf32> to vector<8x128xf32>
    %5 = arith.addf %2, %4 : vector<8x128xf32>
    %c0_5 = arith.constant 0 : index
    %c0_6 = arith.constant 0 : index
    %6 = vector.load %arg5[%c0_5, %c0_6] : memref<8x128xf32, #tpu.memory_space<vmem>>, vector<8x128xf32>
    tpu.vector_store %arg5[%c0_5, %c0_6], %5 {strides = array<i32>} : memref<8x128xf32, #tpu.memory_space<vmem>>, vector<8x128xf32>,
    return
  }
  func.func @transform_0(%arg0: i32, %arg1: i32) -> (i32, i32) {
    %c0_i32 = arith.constant 0 : i32
    %c0_i32_0 = arith.constant 0 : i32
    return %arg0, %c0_i32 : i32, i32
  }
  func.func @transform_1(%arg0: i32, %arg1: i32) -> (i32, i32) {
    %c0_i32 = arith.constant 0 : i32
    %c0_i32_0 = arith.constant 0 : i32
    return %c0_i32, %arg1 : i32, i32
  }
  func.func @transform_2(%arg0: i32, %arg1: i32) -> (i32, i32) {
    %c0_i32 = arith.constant 0 : i32
    %c0_i32_0 = arith.constant 0 : i32
    return %c0_i32, %arg1 : i32, i32
  }
  func.func @transform_3(%arg0: i32, %arg1: i32) -> (i32, i32) {
    %c0_i32 = arith.constant 0 : i32
    return %arg0, %arg1 : i32, i32
  }
}

</mosaic_0001>

<bundles_post_ra>
// kernel: tpu_custom_call.1
= control target key start
LH: loop header
LB: loop body
LE: loop exit
PB: predicated region body
PF: predicated region fallthrough
CT: control target
= control target key end

     0   :  { %8 = vsyncpa [#allocation3], 0  ;;  %s307_s0 = inlined_call_operand.hbm [shape: bf16[8,128], index: 0, kind: input, shape index: {}]   ;;  %s308_s1 = inlined_call_operand.hbm [shape: bf16[128,128], index: 1, kind: input, shape index: {}]   ;;  %s309_s2 = inlined_call_operand.vmem [shape: f32[1,128], index: 2, kind: input, shape index: {}]   ;;  %s310_s3 = inlined_call_operand.hbm [shape: f32[8,128], index: 3, kind: output, shape index: {}]  }
   0x1   :  { %9 = vsyncpa [#allocation6], 0 }
   0x2   :  { %10 = vsyncpa [#allocation4], 0  ;;  %s16_s14 = sshll.u32 %s307_s0, 4  ;;  %s270_s15 = smov [#allocation2]   ;;  %s17_s14 = int_to_ptr.hbm [resolvable:$true] %s16_s14 }
   0x3   :  { %s18_s16 = sshll.u32 %s270_s15, 4  ;;  %s26_s19 = sshll.u32 %s308_s1, 4  ;;  %s19_s16 = int_to_ptr.vmem [resolvable:$true] %s18_s16  ;;  %s27_s19 = int_to_ptr.hbm [resolvable:$true] %s26_s19 }
   0x4   :  { %21 = dma.hbm_to_vmem [thread:$0]  %s17_s14, 64, %s19_s16, [#allocation3]  }
   0x5   :  { %s271_s20 = smov [#allocation5]   ;;  %s272_s22 = smov 64  }
   0x6   :  { %s28_s21 = sshll.u32 %s271_s20, 4  ;;  %s273_s23 = smov 4   ;;  %s29_s21 = int_to_ptr.vmem [resolvable:$true] %s28_s21 }
   0x7   :  { %34 = dma.hbm_to_vmem [thread:$0]  %s27_s19, 1024, %s29_s21, [#allocation6], %s272_s22, %s272_s22, %s273_s23  }
   0x8   :  { %264 = dma.done.wait [#allocation3], 64  }
   0x9   :  { %265 = vsyncadd [#allocation3], 4294967232 }
   0xa   :  { %266 = dma.done.wait [#allocation6], 1024  }
   0xb   :  { %267 = vsyncadd [#allocation6], 4294966272  ;;  %v185_v0 = vld [vmem:[#allocation5 + $0x38] sm:$0xff]  ;;  %v184_v1 = vld [vmem:[#allocation5 + $0x30] sm:$0xff]  ;;  %s274_s24 = smov [#allocation7]   ;;  %s135_s28 = sshll.u32 %s310_s3, 4  ;;  %s136_s28 = int_to_ptr.hbm [resolvable:$true] %s135_s28 }
   0xc   :  { %114 = vmatpush.bf16.msra.mxu0 %v185_v0  ;;  %v183_v2 = vld [vmem:[#allocation5 + $0x28] sm:$0xff]  ;;  %v182_v3 = vld [vmem:[#allocation5 + $0x20] sm:$0xff]  ;;  %v181_v4 = vld [vmem:[#allocation5 + $0x18] sm:$0xff]  ;;  %s133_s25 = sshll.u32 %s274_s24, 4  ;;  %s134_s25 = int_to_ptr.vmem [resolvable:$true] %s133_s25 }
   0xd   :  { %v180_v5 = vld [vmem:[#allocation5 + $0x10] sm:$0xff]  ;;  %v179_v6 = vld [vmem:[#allocation5 + $0x8] sm:$0xff]  ;;  %v178_v7 = vld [vmem:[#allocation5] sm:$0xff] }
   0xe   :  { %v45_v8 = vld [vmem:[#allocation2] sm:$0xf] }
   0xf   :  { %v191_v9 = vld [vmem:[%s309_s2] ss:$0 sm:$0xff] }
  0x10   :  { %115 = vmatpush.bf16.msra.mxu0 %v184_v1 }
  0x14   :  { %116 = vmatpush.bf16.msra.mxu0 %v183_v2 }
  0x18   :  { %117 = vmatpush.bf16.msra.mxu0 %v182_v3 }
  0x1c   :  { %118 = vmatpush.bf16.msra.mxu0 %v181_v4 }
  0x20   :  { %119 = vmatpush.bf16.msra.mxu0 %v180_v5 }
  0x24   :  { %120 = vmatpush.bf16.msra.mxu0 %v179_v6 }
  0x28   :  { %121 = vmatpush.bf16.msra.mxu0 %v178_v7 }
  0x2b   :  { %122 = vmatmul.bf16.vlgmr.msra.gmra.mxu0 %v45_v8 }
  0xa8   :  { %v123_v10 = vpop.f32.mrf.mxu0 }
  0xa9   :  { %v124_v11 = vadd.f32 %v191_v9, %v123_v10 }
  0xab   :  { %127 = vst [vmem:[#allocation7] sm:$0xff] %v124_v11 }
  0xac   :  { %138 = dma.vmem_to_hbm [thread:$0]  %s134_s25, 128, %s136_s28, [#allocation4]  }
  0xb0   :  { %v125_v12 = vpop.f32.mrf.mxu0 }
  0xb1   :  { %268 = dma.done.wait [#allocation4], 128  }
  0xb2   :  { %269 = vsyncadd [#allocation4], 4294967168 }
  0xb3   :  { %143 = vsyncpa [#allocation3], 1 }
  0xb4   :  { %144 = vsyncpa [#allocation6], 1 }
  0xb5   :  { %145 = vsyncpa [#allocation4], 1 }

</bundles_post_ra>
